<compile_context>
chip_gen: v7x
topology: tpu7x:2x2x1
jax: 0.10.0
libtpu: 0.0.40
codegen_flags: <defaults>
</compile_context>

<pallas_src>
import numpy as np
import jax
import jax.numpy as jnp
from jax.experimental import pallas as pl
from jax.experimental.pallas import tpu as pltpu

# ---------------- small config (consistent with the module) ----------------
B = 2            # batch
L = 16           # seq_len
D = 32           # d_model (== 2 * seq_len; the quirk folding relies on this)
H = 8            # n_heads (FourierBlock hard-codes 8 head blocks)
E = D // H       # head dim
F = 64           # d_ff
K_MA = 5         # moving_avg kernel size (odd -> symmetric edge padding)
MODES = 4        # retained Fourier modes (mode_select = 'low')
LN_EPS = 1e-5

BL = B * L       # rows of the folded 2-D problem
NT = 2 * MODES   # spectral terms (real + imag per mode)

# row offsets inside the packed bf16 [*, D] constant buffer (all multiples of 16)
OFF_UR = 0                      # NT blocks of (Wq @ R_k)[:, perm], [NT*D, D]
OFF_AK = OFF_UR + NT * D        # K_MA * moving-average operator, [B*L, B*L]
OFF_MEAN = OFF_AK + BL          # per-batch time-mean operator,  [B*L, B*L]
OFF_WO = OFF_MEAN + BL          # out-projection Wo,             [D, D]
OFF_W2 = OFF_WO + D             # conv2 weight,                  [F, D]
OFF_W4 = OFF_W2 + F             # conv4 weight,                  [F, D]
C32_ROWS = OFF_W4 + F


# ============================ fused Pallas kernel ===========================
def fused_encoder_kernel(x_ref, c32_ref, c64_ref, mw_ref, aff_ref, out_ref):
    f32 = jnp.float32
    bf16 = jnp.bfloat16

    def mm(a, b):
        # single-pass bf16 MXU matmul, f32 accumulation (== TPU default precision)
        return jnp.dot(a.astype(bf16), b.astype(bf16), preferred_element_type=f32)

    def mm_t(a, b):
        # a @ b^T (contract last dims) -- used once for the MXU identity transpose
        return jax.lax.dot_general(a.astype(bf16), b.astype(bf16),
                                   dimension_numbers=(((1,), (1,)), ((), ())),
                                   preferred_element_type=f32)

    x = x_ref[...]                                      # [B*L, D] f32

    # static (aligned) slices of the packed constant buffers
    w1 = c64_ref[0:D, :]                                # [D, F]
    w3 = c64_ref[D:2 * D, :]                            # [D, F]
    w2 = c32_ref[OFF_W2:OFF_W2 + F, :]                  # [F, D]
    w4 = c32_ref[OFF_W4:OFF_W4 + F, :]                  # [F, D]
    avg_k = c32_ref[OFF_AK:OFF_AK + BL, :]              # K_MA * moving-average op
    mean_op = c32_ref[OFF_MEAN:OFF_MEAN + BL, :]        # per-batch time-mean op
    inv_k = 1.0 / K_MA

    # ---- conv1 -> relu -> conv2 (1x1 convs == channel matmuls); dropout = id ----
    y = mm(jnp.maximum(mm(x, w1), 0.0), w2)
    s = x + y
    # ---- decomp2: seasonal = s - MA(s); MA at default precision, subtract in f32 ----
    x1 = s - inv_k * mm(avg_k, s)

    # ---- FourierBlock (+ query projection), fully folded into dense operators.
    #      8 independent small dots build GROWS; one K=256 full-depth contraction
    #      against the stacked per-term time operators replaces the serial sum. ----
    x1b = x1.astype(bf16)
    grows = jnp.concatenate(
        [jnp.dot(x1b, c32_ref[OFF_UR + k * D:OFF_UR + (k + 1) * D, :],
                 preferred_element_type=f32) for k in range(NT)],
        axis=0)                                         # [NT*B*L, D] = [256, 32]
    vperm = mm(mw_ref[...], grows)                      # [B*L, D], columns = [even;odd]

    # ---- ".view(B, L, H*E)" quirk: a genuine time <-> channel-pair transpose.
    #      Done once on the MXU via an identity A @ B^T contraction (iota identity,
    #      no extra input DMA).  vpt[p, b*L + t] = V_b[t, perm[p]] ----
    ri = jax.lax.broadcasted_iota(jnp.int32, (D, D), 0)
    ci = jax.lax.broadcasted_iota(jnp.int32, (D, D), 1)
    eye = jnp.where(ri == ci, 1.0, 0.0)
    vpt = mm_t(eye, vperm)                              # [D, B*L]

    wo_top = c32_ref[OFF_WO:OFF_WO + L, :]              # Wo[:L, :]
    wo_bot = c32_ref[OFF_WO + L:OFF_WO + D, :]          # Wo[L:, :]
    blocks = []
    for b in range(B):
        csl = slice(b * L, (b + 1) * L)
        blocks.append(mm(vpt[0:L, csl], wo_top) + mm(vpt[L:D, csl], wo_bot))
    # + precomputed affine term (bq pushed through the spectral branch, plus bo)
    attn = jnp.concatenate(blocks, axis=0) + aff_ref[0:BL, :]    # [B*L, D] f32

    # ---- residual + decomp3 ----
    x2 = x1 + attn
    x3 = x2 - inv_k * mm(avg_k, x2)

    # ---- conv3 -> relu -> conv4 + decomp4 ----
    y2 = mm(jnp.maximum(mm(x3, w3), 0.0), w4)
    s2 = x3 + y2
    r = s2 - inv_k * mm(avg_k, s2)

    # ---- my_Layernorm: LayerNorm over channels, then subtract per-batch time mean ----
    gamma = aff_ref[BL:BL + 1, :]
    beta = aff_ref[BL + 1:BL + 2, :]
    mu = jnp.mean(r, axis=-1, keepdims=True)
    var = jnp.mean((r - mu) ** 2, axis=-1, keepdims=True)
    xhat = (r - mu) * jax.lax.rsqrt(var + LN_EPS) * gamma + beta
    out_ref[...] = xhat - mm(mean_op, xhat)


# ============================ wrapper (glue) ================================
def split_two_encoder_forward(x, consts):
    c32, c64, mwide, aff = consts
    Bn, Ln, Dn = x.shape
    x2d = x.reshape(Bn * Ln, Dn)                        # contiguous -> free reshape

    vmem = pl.BlockSpec(memory_space=pltpu.MemorySpace.VMEM)
    out = pl.pallas_call(
        fused_encoder_kernel,
        out_shape=jax.ShapeDtypeStruct((Bn * Ln, Dn), jnp.float32),
        in_specs=[vmem] * 5,
        out_specs=vmem,
    )(x2d, c32, c64, mwide, aff)

    return out.reshape(Bn, Ln, Dn), None                # FourierBlock returns attn=None


# ===================== constant (glue) operator builders ====================
def build_dft_matrices(Ln, index):
    """Forward (CrT/CiT: [M,L]) and inverse (DrT/DiT: [L,M]) real-DFT matrices."""
    M = len(index)
    t = np.arange(Ln, dtype=np.float64)
    CrT = np.zeros((M, Ln)); CiT = np.zeros((M, Ln))
    DrT = np.zeros((Ln, M)); DiT = np.zeros((Ln, M))
    for m, f in enumerate(index):
        ang = 2.0 * np.pi * f * t / Ln
        CrT[m] = np.cos(ang)
        CiT[m] = -np.sin(ang)
        real_bin = (f == 0) or (Ln % 2 == 0 and f == Ln // 2)   # irfft drops imag here
        coef = 1.0 if real_bin else 2.0
        DrT[:, m] = coef * np.cos(ang) / Ln
        DiT[:, m] = 0.0 if real_bin else -coef * np.sin(ang) / Ln
    return CrT, CiT, DrT, DiT


def build_blockdiag_fourier(WFr, WFi):
    """Fold per-head complex weights1 [H,E,E,M] into block-diag [M,D,D] matrices."""
    Hh, Ee, _, M = WFr.shape
    Dd = Hh * Ee
    BDr = np.zeros((M, Dd, Dd)); BDi = np.zeros((M, Dd, Dd))
    for m in range(M):
        for hh in range(Hh):
            BDr[m, hh * Ee:(hh + 1) * Ee, hh * Ee:(hh + 1) * Ee] = WFr[hh, :, :, m]
            BDi[m, hh * Ee:(hh + 1) * Ee, hh * Ee:(hh + 1) * Ee] = WFi[hh, :, :, m]
    return BDr, BDi


def build_fused_constants(W1, W2, W3, W4, Wq, bq, Wo, bo, WFr, WFi, gamma, beta):
    """Precompute (numpy, f64) all folded operators and pack them into 4 buffers."""
    # TODO(synk): the .view-quirk folding below is specialised to d_model == 2*seq_len.
    assert D == 2 * L, "quirk folding is specialised to d_model == 2*seq_len"
    index = list(range(min(MODES, L // 2)))             # mode_select = 'low'
    M = len(index)
    f64 = np.float64
    W1, W2, W3, W4 = (np.asarray(a, f64) for a in (W1, W2, W3, W4))
    Wq, bq, Wo, bo = (np.asarray(a, f64) for a in (Wq, bq, Wo, bo))
    WFr, WFi = np.asarray(WFr, f64), np.asarray(WFi, f64)

    # moving-average operator (edge-replicated window), scaled by K_MA so all entries
    # are small integers (exact in bf16); the kernel multiplies the result by 1/K_MA.
    pad = (K_MA - 1) // 2
    A_ma = np.zeros((L, L), f64)
    for tt in range(L):
        for j in range(K_MA):
            src = min(max(tt + j - pad, 0), L - 1)
            A_ma[tt, src] += 1.0
    AK = np.kron(np.eye(B), A_ma)                                   # [B*L, B*L]
    MEANB = np.kron(np.eye(B), np.full((L, L), 1.0 / L))            # [B*L, B*L]

    CrT, CiT, DrT, DiT = build_dft_matrices(L, index)
    BDr, BDi = build_blockdiag_fourier(WFr, WFi)
    A_t = np.zeros((M, L, L)); B_t = np.zeros((M, L, L))
    for m in range(M):
        A_t[m] = np.outer(DrT[:, m], CrT[m, :]) + np.outer(DiT[:, m], CiT[m, :])
        B_t[m] = np.outer(DiT[:, m], CrT[m, :]) - np.outer(DrT[:, m], CiT[m, :])

    # column permutation [even ; odd] turns the ".view" quirk into two static
    # row-block slices after the single in-kernel transpose.
    perm = np.concatenate([np.arange(0, D, 2), np.arange(1, D, 2)])
    ur_blocks, mw_blocks = [], []
    for k in range(NT):
        Rk = BDr[k] if k < M else BDi[k - M]
        Lk = A_t[k] if k < M else B_t[k - M]
        ur_blocks.append((Wq @ Rk)[:, perm])            # [D, D]
        mw_blocks.append(np.kron(np.eye(B), Lk))        # [B*L, B*L]
    URROWS = np.concatenate(ur_blocks, axis=0)          # [NT*D, D]
    MWIDE = np.concatenate(mw_blocks, axis=1)           # [B*L, NT*B*L]

    # affine part of the attention branch: bq pushed through rfft/mix/irfft,
    # the .view quirk and Wo, plus bo (same for every batch).
    Qc = np.ones((L, 1)) @ bq
    vc = np.zeros((L, D))
    for m in range(M):
        vc += A_t[m] @ Qc @ BDr[m] + B_t[m] @ Qc @ BDi[m]
    attn_c = vc.T.reshape(L, D) @ Wo + bo
    ATTN_CONST = np.tile(attn_c, (B, 1))                # [B*L, D]

    # ---- pack into few buffers: matmul operands -> bf16, additive/scale -> f32 ----
    c32 = np.zeros((C32_ROWS, D), f64)
    c32[OFF_UR:OFF_UR + NT * D] = URROWS
    c32[OFF_AK:OFF_AK + BL] = AK
    c32[OFF_MEAN:OFF_MEAN + BL] = MEANB
    c32[OFF_WO:OFF_WO + D] = Wo
    c32[OFF_W2:OFF_W2 + F] = W2
    c32[OFF_W4:OFF_W4 + F] = W4
    c64 = np.concatenate([W1, W3], axis=0)              # [2D, F]

    aff = np.zeros((BL + 2, D), f64)
    aff[0:BL] = ATTN_CONST
    aff[BL] = np.asarray(gamma, f64).reshape(-1)
    aff[BL + 1] = np.asarray(beta, f64).reshape(-1)

    bf = lambda a: jnp.asarray(np.asarray(a, np.float32), jnp.bfloat16)
    return (bf(c32), bf(c64), bf(MWIDE), jnp.asarray(aff, jnp.float32))


# ====================== pure-JAX reference (for checking) ===================
def _moving_avg_ref(x, k):
    pad = (k - 1) // 2
    front = jnp.repeat(x[:, :1, :], pad, axis=1)
    end = jnp.repeat(x[:, -1:, :], pad, axis=1)
    xp = jnp.concatenate([front, x, end], axis=1)
    return jnp.stack([jnp.mean(xp[:, t:t + k, :], axis=1) for t in range(x.shape[1])],
                     axis=1)


def _series_decomp_ref(x, k):
    m = _moving_avg_ref(x, k)
    return x - m, m


def _fourier_block_ref(q4, WFr, WFi, index):
    Bn, Ln, Hn, En = q4.shape
    xq = jnp.transpose(q4, (0, 2, 3, 1))                      # [B, H, E, L]
    x_ft = jnp.fft.rfft(xq, axis=-1)
    out_r = jnp.zeros((Bn, Hn, En, Ln // 2 + 1), jnp.float32)
    out_i = jnp.zeros_like(out_r)
    for wi, i in enumerate(index):
        xr, xi = jnp.real(x_ft[..., i]), jnp.imag(x_ft[..., i])
        vr = (jnp.einsum('bhi,hio->bho', xr, WFr[..., wi])
              - jnp.einsum('bhi,hio->bho', xi, WFi[..., wi]))
        vi = (jnp.einsum('bhi,hio->bho', xr, WFi[..., wi])
              + jnp.einsum('bhi,hio->bho', xi, WFr[..., wi]))
        out_r = out_r.at[..., wi].set(vr)
        out_i = out_i.at[..., wi].set(vi)
    return jnp.fft.irfft(out_r + 1j * out_i, n=Ln, axis=-1)   # [B, H, E, L]


def reference_forward(x, raw):
    (W1, W2, W3, W4, Wq, bq, Wo, bo, WFr, WFi, gamma, beta) = raw
    Bn, Ln, Dn = x.shape
    index = list(range(min(MODES, Ln // 2)))
    y = jnp.maximum(x @ W1, 0.0) @ W2
    x1, _ = _series_decomp_ref(x + y, K_MA)
    q = (x1 @ Wq + bq).reshape(Bn, Ln, H, E)
    xt = _fourier_block_ref(q, WFr, WFi, index)
    new_x = xt.reshape(Bn, Ln, H * E)                         # faithful .view quirk
    x2 = x1 + (new_x @ Wo + bo)
    x3, _ = _series_decomp_ref(x2, K_MA)
    y2 = jnp.maximum(x3 @ W3, 0.0) @ W4
    r, _ = _series_decomp_ref(x3 + y2, K_MA)
    mu = jnp.mean(r, axis=-1, keepdims=True)
    var = jnp.mean((r - mu) ** 2, axis=-1, keepdims=True)
    xhat = (r - mu) * jax.lax.rsqrt(var + LN_EPS) * gamma + beta
    return xhat - jnp.mean(xhat, axis=1, keepdims=True)


# ================================== main ====================================
if __name__ == "__main__":
    key = jax.random.PRNGKey(0)
    ks = jax.random.split(key, 11)

    # deterministic synthetic parameters (shapes follow the module's __init__)
    W1 = 0.1 * jax.random.normal(ks[0], (D, F), jnp.float32)   # conv1 (1x1), no bias
    W2 = 0.1 * jax.random.normal(ks[1], (F, D), jnp.float32)   # conv2
    W3 = 0.1 * jax.random.normal(ks[2], (D, F), jnp.float32)   # conv3
    W4 = 0.1 * jax.random.normal(ks[3], (F, D), jnp.float32)   # conv4
    Wq = 0.1 * jax.random.normal(ks[4], (D, D), jnp.float32)   # query_projection
    bq = 0.1 * jax.random.normal(ks[5], (1, D), jnp.float32)
    Wo = 0.1 * jax.random.normal(ks[6], (D, D), jnp.float32)   # out_projection
    bo = 0.1 * jax.random.normal(ks[7], (1, D), jnp.float32)
    scale = 1.0 / (D * D)                                      # FourierBlock weights1
    WFr = scale * jax.random.uniform(ks[8], (H, E, E, MODES), jnp.float32)
    WFi = scale * jax.random.uniform(ks[9], (H, E, E, MODES), jnp.float32)
    gamma = jnp.ones((1, D), jnp.float32)                      # my_Layernorm defaults
    beta = jnp.zeros((1, D), jnp.float32)
    # NOTE: key/value projections exist in AutoCorrelationLayer but FourierBlock
    # ignores k, v, so they have no effect on the output and are not materialized.

    x = jax.random.normal(ks[10], (B, L, D), jnp.float32)

    consts = build_fused_constants(np.asarray(W1), np.asarray(W2), np.asarray(W3),
                                   np.asarray(W4), np.asarray(Wq), np.asarray(bq),
                                   np.asarray(Wo), np.asarray(bo),
                                   np.asarray(WFr), np.asarray(WFi),
                                   np.asarray(gamma), np.asarray(beta))

    res, attn = split_two_encoder_forward(x, consts)
    res = jax.block_until_ready(res)
    assert res.shape == (B, L, D) and attn is None

    ref = jax.block_until_ready(
        reference_forward(x, (W1, W2, W3, W4, Wq, bq, Wo, bo, WFr, WFi, gamma, beta)))
    np.testing.assert_allclose(np.asarray(res), np.asarray(ref), atol=2e-2, rtol=2e-2)

    print("KERNEL_OK")
</pallas_src>

<mosaic_0001>
module attributes {stable_mosaic.version = 11 : i64} {
  func.func @fused_encoder_kernel(%arg0: memref<32x32xf32, #tpu.memory_space<vmem>>, %arg1: memref<480x32xbf16, #tpu.memory_space<vmem>>, %arg2: memref<64x64xbf16, #tpu.memory_space<vmem>>, %arg3: memref<32x256xbf16, #tpu.memory_space<vmem>>, %arg4: memref<34x32xf32, #tpu.memory_space<vmem>>, %arg5: memref<32x32xf32, #tpu.memory_space<vmem>>) attributes {dimension_semantics = [], scalar_prefetch = 0 : i64, scratch_operands = 0 : i64, tpu.core_type = #tpu.core_type<tc>} {
    %c0 = arith.constant 0 : index
    %c0_0 = arith.constant 0 : index
    %0 = vector.load %arg0[%c0, %c0_0] : memref<32x32xf32, #tpu.memory_space<vmem>>, vector<32x32xf32>
    %c0_1 = arith.constant 0 : index
    %c0_2 = arith.constant 0 : index
    %1 = vector.load %arg2[%c0_1, %c0_2] : memref<64x64xbf16, #tpu.memory_space<vmem>>, vector<32x64xbf16>
    %c32 = arith.constant 32 : index
    %c0_3 = arith.constant 0 : index
    %2 = vector.load %arg2[%c32, %c0_3] : memref<64x64xbf16, #tpu.memory_space<vmem>>, vector<32x64xbf16>
    %c352 = arith.constant 352 : index
    %c0_4 = arith.constant 0 : index
    %3 = vector.load %arg1[%c352, %c0_4] : memref<480x32xbf16, #tpu.memory_space<vmem>>, vector<64x32xbf16>
    %c416 = arith.constant 416 : index
    %c0_5 = arith.constant 0 : index
    %4 = vector.load %arg1[%c416, %c0_5] : memref<480x32xbf16, #tpu.memory_space<vmem>>, vector<64x32xbf16>
    %c256 = arith.constant 256 : index
    %c0_6 = arith.constant 0 : index
    %5 = vector.load %arg1[%c256, %c0_6] : memref<480x32xbf16, #tpu.memory_space<vmem>>, vector<32x32xbf16>
    %c288 = arith.constant 288 : index
    %c0_7 = arith.constant 0 : index
    %6 = vector.load %arg1[%c288, %c0_7] : memref<480x32xbf16, #tpu.memory_space<vmem>>, vector<32x32xbf16>
    %7 = arith.truncf %0 : vector<32x32xf32> to vector<32x32xbf16>
    %cst = arith.constant dense<0.000000e+00> : vector<32x64xf32>
    %8 = tpu.matmul %7, %1, %cst {dimension_numbers = #tpu.dot_dimension_numbers<[1], [0], [0], [1], [0, 0, 1, 1], [], []>} : vector<32x32xbf16>, vector<32x64xbf16>, vector<32x64xf32> -> vector<32x64xf32>
    %cst_8 = arith.constant 0.000000e+00 : f32
    %9 = vector.broadcast %cst_8 : f32 to vector<32x64xf32>
    %10 = arith.maximumf %8, %9 : vector<32x64xf32>
    %11 = arith.truncf %10 : vector<32x64xf32> to vector<32x64xbf16>
    %cst_9 = arith.constant dense<0.000000e+00> : vector<32x32xf32>
    %12 = tpu.matmul %11, %3, %cst_9 {dimension_numbers = #tpu.dot_dimension_numbers<[1], [0], [0], [1], [0, 0, 1, 1], [], []>} : vector<32x64xbf16>, vector<64x32xbf16>, vector<32x32xf32> -> vector<32x32xf32>
    %13 = arith.addf %0, %12 : vector<32x32xf32>
    %14 = arith.truncf %13 : vector<32x32xf32> to vector<32x32xbf16>
    %cst_10 = arith.constant dense<0.000000e+00> : vector<32x32xf32>
    %15 = tpu.matmul %5, %14, %cst_10 {dimension_numbers = #tpu.dot_dimension_numbers<[1], [0], [0], [1], [0, 0, 1, 1], [], []>} : vector<32x32xbf16>, vector<32x32xbf16>, vector<32x32xf32> -> vector<32x32xf32>
    %cst_11 = arith.constant 2.000000e-01 : f32
    %16 = vector.broadcast %cst_11 : f32 to vector<32x32xf32>
    %17 = arith.mulf %16, %15 : vector<32x32xf32>
    %18 = arith.subf %13, %17 : vector<32x32xf32>
    %19 = arith.truncf %18 : vector<32x32xf32> to vector<32x32xbf16>
    %c0_12 = arith.constant 0 : index
    %c0_13 = arith.constant 0 : index
    %20 = vector.load %arg1[%c0_12, %c0_13] : memref<480x32xbf16, #tpu.memory_space<vmem>>, vector<32x32xbf16>
    %cst_14 = arith.constant dense<0.000000e+00> : vector<32x32xf32>
    %21 = tpu.matmul %19, %20, %cst_14 {dimension_numbers = #tpu.dot_dimension_numbers<[1], [0], [0], [1], [0, 0, 1, 1], [], []>} : vector<32x32xbf16>, vector<32x32xbf16>, vector<32x32xf32> -> vector<32x32xf32>
    %c32_15 = arith.constant 32 : index
    %c0_16 = arith.constant 0 : index
    %22 = vector.load %arg1[%c32_15, %c0_16] : memref<480x32xbf16, #tpu.memory_space<vmem>>, vector<32x32xbf16>
    %cst_17 = arith.constant dense<0.000000e+00> : vector<32x32xf32>
    %23 = tpu.matmul %19, %22, %cst_17 {dimension_numbers = #tpu.dot_dimension_numbers<[1], [0], [0], [1], [0, 0, 1, 1], [], []>} : vector<32x32xbf16>, vector<32x32xbf16>, vector<32x32xf32> -> vector<32x32xf32>
    %c64 = arith.constant 64 : index
    %c0_18 = arith.constant 0 : index
    %24 = vector.load %arg1[%c64, %c0_18] : memref<480x32xbf16, #tpu.memory_space<vmem>>, vector<32x32xbf16>
    %cst_19 = arith.constant dense<0.000000e+00> : vector<32x32xf32>
    %25 = tpu.matmul %19, %24, %cst_19 {dimension_numbers = #tpu.dot_dimension_numbers<[1], [0], [0], [1], [0, 0, 1, 1], [], []>} : vector<32x32xbf16>, vector<32x32xbf16>, vector<32x32xf32> -> vector<32x32xf32>
    %c96 = arith.constant 96 : index
    %c0_20 = arith.constant 0 : index
    %26 = vector.load %arg1[%c96, %c0_20] : memref<480x32xbf16, #tpu.memory_space<vmem>>, vector<32x32xbf16>
    %cst_21 = arith.constant dense<0.000000e+00> : vector<32x32xf32>
    %27 = tpu.matmul %19, %26, %cst_21 {dimension_numbers = #tpu.dot_dimension_numbers<[1], [0], [0], [1], [0, 0, 1, 1], [], []>} : vector<32x32xbf16>, vector<32x32xbf16>, vector<32x32xf32> -> vector<32x32xf32>
    %c128 = arith.constant 128 : index
    %c0_22 = arith.constant 0 : index
    %28 = vector.load %arg1[%c128, %c0_22] : memref<480x32xbf16, #tpu.memory_space<vmem>>, vector<32x32xbf16>
    %cst_23 = arith.constant dense<0.000000e+00> : vector<32x32xf32>
    %29 = tpu.matmul %19, %28, %cst_23 {dimension_numbers = #tpu.dot_dimension_numbers<[1], [0], [0], [1], [0, 0, 1, 1], [], []>} : vector<32x32xbf16>, vector<32x32xbf16>, vector<32x32xf32> -> vector<32x32xf32>
    %c160 = arith.constant 160 : index
    %c0_24 = arith.constant 0 : index
    %30 = vector.load %arg1[%c160, %c0_24] : memref<480x32xbf16, #tpu.memory_space<vmem>>, vector<32x32xbf16>
    %cst_25 = arith.constant dense<0.000000e+00> : vector<32x32xf32>
    %31 = tpu.matmul %19, %30, %cst_25 {dimension_numbers = #tpu.dot_dimension_numbers<[1], [0], [0], [1], [0, 0, 1, 1], [], []>} : vector<32x32xbf16>, vector<32x32xbf16>, vector<32x32xf32> -> vector<32x32xf32>
    %c192 = arith.constant 192 : index
    %c0_26 = arith.constant 0 : index
    %32 = vector.load %arg1[%c192, %c0_26] : memref<480x32xbf16, #tpu.memory_space<vmem>>, vector<32x32xbf16>
    %cst_27 = arith.constant dense<0.000000e+00> : vector<32x32xf32>
    %33 = tpu.matmul %19, %32, %cst_27 {dimension_numbers = #tpu.dot_dimension_numbers<[1], [0], [0], [1], [0, 0, 1, 1], [], []>} : vector<32x32xbf16>, vector<32x32xbf16>, vector<32x32xf32> -> vector<32x32xf32>
    %c224 = arith.constant 224 : index
    %c0_28 = arith.constant 0 : index
    %34 = vector.load %arg1[%c224, %c0_28] : memref<480x32xbf16, #tpu.memory_space<vmem>>, vector<32x32xbf16>
    %cst_29 = arith.constant dense<0.000000e+00> : vector<32x32xf32>
    %35 = tpu.matmul %19, %34, %cst_29 {dimension_numbers = #tpu.dot_dimension_numbers<[1], [0], [0], [1], [0, 0, 1, 1], [], []>} : vector<32x32xbf16>, vector<32x32xbf16>, vector<32x32xf32> -> vector<32x32xf32>
    %36 = tpu.concatenate %21, %23, %25, %27, %29, %31, %33, %35 in 0 : vector<32x32xf32>, vector<32x32xf32>, vector<32x32xf32>, vector<32x32xf32>, vector<32x32xf32>, vector<32x32xf32>, vector<32x32xf32>, vector<32x32xf32> -> vector<256x32xf32>
    %c0_30 = arith.constant 0 : index
    %c0_31 = arith.constant 0 : index
    %37 = vector.load %arg3[%c0_30, %c0_31] : memref<32x256xbf16, #tpu.memory_space<vmem>>, vector<32x256xbf16>
    %38 = arith.truncf %36 : vector<256x32xf32> to vector<256x32xbf16>
    %cst_32 = arith.constant dense<0.000000e+00> : vector<32x32xf32>
    %39 = tpu.matmul %37, %38, %cst_32 {dimension_numbers = #tpu.dot_dimension_numbers<[1], [0], [0], [1], [0, 0, 1, 1], [], []>} : vector<32x256xbf16>, vector<256x32xbf16>, vector<32x32xf32> -> vector<32x32xf32>
    %40 = tpu.iota {dimensions = array<i32: 0>} : vector<32x32xi32>
    %41 = tpu.iota {dimensions = array<i32: 1>} : vector<32x32xi32>
    %42 = arith.cmpi eq, %40, %41 : vector<32x32xi32>
    %cst_33 = arith.constant 1.000000e+00 : f32
    %cst_34 = arith.constant 0.000000e+00 : f32
    %43 = vector.broadcast %cst_33 : f32 to vector<32x32xf32>
    %44 = vector.broadcast %cst_34 : f32 to vector<32x32xf32>
    %45 = arith.select %42, %43, %44 : vector<32x32xi1>, vector<32x32xf32>
    %46 = arith.truncf %45 : vector<32x32xf32> to vector<32x32xbf16>
    %47 = arith.truncf %39 : vector<32x32xf32> to vector<32x32xbf16>
    %cst_35 = arith.constant dense<0.000000e+00> : vector<32x32xf32>
    %48 = tpu.matmul %46, %47, %cst_35 {dimension_numbers = #tpu.dot_dimension_numbers<[1], [1], [0], [0], [0, 0, 1, 0], [], []>} : vector<32x32xbf16>, vector<32x32xbf16>, vector<32x32xf32> -> vector<32x32xf32>
    %c320 = arith.constant 320 : index
    %c0_36 = arith.constant 0 : index
    %49 = vector.load %arg1[%c320, %c0_36] : memref<480x32xbf16, #tpu.memory_space<vmem>>, vector<16x32xbf16>
    %c336 = arith.constant 336 : index
    %c0_37 = arith.constant 0 : index
    %50 = vector.load %arg1[%c336, %c0_37] : memref<480x32xbf16, #tpu.memory_space<vmem>>, vector<16x32xbf16>
    %51 = vector.extract_strided_slice %48 {offsets = [0, 0], sizes = [16, 16], strides = [1, 1]} : vector<32x32xf32> to vector<16x16xf32>
    %52 = arith.truncf %51 : vector<16x16xf32> to vector<16x16xbf16>
    %cst_38 = arith.constant dense<0.000000e+00> : vector<16x32xf32>
    %53 = tpu.matmul %52, %49, %cst_38 {dimension_numbers = #tpu.dot_dimension_numbers<[1], [0], [0], [1], [0, 0, 1, 1], [], []>} : vector<16x16xbf16>, vector<16x32xbf16>, vector<16x32xf32> -> vector<16x32xf32>
    %54 = vector.extract_strided_slice %48 {offsets = [16, 0], sizes = [16, 16], strides = [1, 1]} : vector<32x32xf32> to vector<16x16xf32>
    %55 = arith.truncf %54 : vector<16x16xf32> to vector<16x16xbf16>
    %cst_39 = arith.constant dense<0.000000e+00> : vector<16x32xf32>
    %56 = tpu.matmul %55, %50, %cst_39 {dimension_numbers = #tpu.dot_dimension_numbers<[1], [0], [0], [1], [0, 0, 1, 1], [], []>} : vector<16x16xbf16>, vector<16x32xbf16>, vector<16x32xf32> -> vector<16x32xf32>
    %57 = arith.addf %53, %56 : vector<16x32xf32>
    %58 = vector.extract_strided_slice %48 {offsets = [0, 16], sizes = [16, 16], strides = [1, 1]} : vector<32x32xf32> to vector<16x16xf32>
    %59 = arith.truncf %58 : vector<16x16xf32> to vector<16x16xbf16>
    %cst_40 = arith.constant dense<0.000000e+00> : vector<16x32xf32>
    %60 = tpu.matmul %59, %49, %cst_40 {dimension_numbers = #tpu.dot_dimension_numbers<[1], [0], [0], [1], [0, 0, 1, 1], [], []>} : vector<16x16xbf16>, vector<16x32xbf16>, vector<16x32xf32> -> vector<16x32xf32>
    %61 = vector.extract_strided_slice %48 {offsets = [16, 16], sizes = [16, 16], strides = [1, 1]} : vector<32x32xf32> to vector<16x16xf32>
    %62 = arith.truncf %61 : vector<16x16xf32> to vector<16x16xbf16>
    %cst_41 = arith.constant dense<0.000000e+00> : vector<16x32xf32>
    %63 = tpu.matmul %62, %50, %cst_41 {dimension_numbers = #tpu.dot_dimension_numbers<[1], [0], [0], [1], [0, 0, 1, 1], [], []>} : vector<16x16xbf16>, vector<16x32xbf16>, vector<16x32xf32> -> vector<16x32xf32>
    %64 = arith.addf %60, %63 : vector<16x32xf32>
    %65 = tpu.concatenate %57, %64 in 0 : vector<16x32xf32>, vector<16x32xf32> -> vector<32x32xf32>
    %c0_42 = arith.constant 0 : index
    %c0_43 = arith.constant 0 : index
    %66 = vector.load %arg4[%c0_42, %c0_43] : memref<34x32xf32, #tpu.memory_space<vmem>>, vector<32x32xf32>
    %67 = arith.addf %65, %66 : vector<32x32xf32>
    %68 = arith.addf %18, %67 : vector<32x32xf32>
    %69 = arith.truncf %68 : vector<32x32xf32> to vector<32x32xbf16>
    %cst_44 = arith.constant dense<0.000000e+00> : vector<32x32xf32>
    %70 = tpu.matmul %5, %69, %cst_44 {dimension_numbers = #tpu.dot_dimension_numbers<[1], [0], [0], [1], [0, 0, 1, 1], [], []>} : vector<32x32xbf16>, vector<32x32xbf16>, vector<32x32xf32> -> vector<32x32xf32>
    %cst_45 = arith.constant 2.000000e-01 : f32
    %71 = vector.broadcast %cst_45 : f32 to vector<32x32xf32>
    %72 = arith.mulf %71, %70 : vector<32x32xf32>
    %73 = arith.subf %68, %72 : vector<32x32xf32>
    %74 = arith.truncf %73 : vector<32x32xf32> to vector<32x32xbf16>
    %cst_46 = arith.constant dense<0.000000e+00> : vector<32x64xf32>
    %75 = tpu.matmul %74, %2, %cst_46 {dimension_numbers = #tpu.dot_dimension_numbers<[1], [0], [0], [1], [0, 0, 1, 1], [], []>} : vector<32x32xbf16>, vector<32x64xbf16>, vector<32x64xf32> -> vector<32x64xf32>
    %cst_47 = arith.constant 0.000000e+00 : f32
    %76 = vector.broadcast %cst_47 : f32 to vector<32x64xf32>
    %77 = arith.maximumf %75, %76 : vector<32x64xf32>
    %78 = arith.truncf %77 : vector<32x64xf32> to vector<32x64xbf16>
    %cst_48 = arith.constant dense<0.000000e+00> : vector<32x32xf32>
    %79 = tpu.matmul %78, %4, %cst_48 {dimension_numbers = #tpu.dot_dimension_numbers<[1], [0], [0], [1], [0, 0, 1, 1], [], []>} : vector<32x64xbf16>, vector<64x32xbf16>, vector<32x32xf32> -> vector<32x32xf32>
    %80 = arith.addf %73, %79 : vector<32x32xf32>
    %81 = arith.truncf %80 : vector<32x32xf32> to vector<32x32xbf16>
    %cst_49 = arith.constant dense<0.000000e+00> : vector<32x32xf32>
    %82 = tpu.matmul %5, %81, %cst_49 {dimension_numbers = #tpu.dot_dimension_numbers<[1], [0], [0], [1], [0, 0, 1, 1], [], []>} : vector<32x32xbf16>, vector<32x32xbf16>, vector<32x32xf32> -> vector<32x32xf32>
    %cst_50 = arith.constant 2.000000e-01 : f32
    %83 = vector.broadcast %cst_50 : f32 to vector<32x32xf32>
    %84 = arith.mulf %83, %82 : vector<32x32xf32>
    %85 = arith.subf %80, %84 : vector<32x32xf32>
    %c32_51 = arith.constant 32 : index
    %c0_52 = arith.constant 0 : index
    %86 = vector.load %arg4[%c32_51, %c0_52] : memref<34x32xf32, #tpu.memory_space<vmem>>, vector<1x32xf32>
    %c33 = arith.constant 33 : index
    %c0_53 = arith.constant 0 : index
    %87 = vector.load %arg4[%c33, %c0_53] : memref<34x32xf32, #tpu.memory_space<vmem>>, vector<1x32xf32>
    %cst_54 = arith.constant dense<0.000000e+00> : vector<32xf32>
    %88 = vector.multi_reduction <add>, %85, %cst_54 [1] : vector<32x32xf32> to vector<32xf32>
    %89 = vector.shape_cast %88 : vector<32xf32> to vector<32x1xf32>
    %cst_55 = arith.constant 3.200000e+01 : f32
    %90 = vector.broadcast %cst_55 : f32 to vector<32x1xf32>
    %91 = arith.divf %89, %90 : vector<32x1xf32>
    %92 = vector.broadcast %91 : vector<32x1xf32> to vector<32x32xf32>
    %93 = arith.subf %85, %92 : vector<32x32xf32>
    %94 = arith.mulf %93, %93 : vector<32x32xf32>
    %cst_56 = arith.constant dense<0.000000e+00> : vector<32xf32>
    %95 = vector.multi_reduction <add>, %94, %cst_56 [1] : vector<32x32xf32> to vector<32xf32>
    %96 = vector.shape_cast %95 : vector<32xf32> to vector<32x1xf32>
    %cst_57 = arith.constant 3.200000e+01 : f32
    %97 = vector.broadcast %cst_57 : f32 to vector<32x1xf32>
    %98 = arith.divf %96, %97 : vector<32x1xf32>
    %99 = vector.broadcast %91 : vector<32x1xf32> to vector<32x32xf32>
    %100 = arith.subf %85, %99 : vector<32x32xf32>
    %cst_58 = arith.constant 9.99999974E-6 : f32
    %101 = vector.broadcast %cst_58 : f32 to vector<32x1xf32>
    %102 = arith.addf %98, %101 : vector<32x1xf32>
    %103 = math.rsqrt %102 : vector<32x1xf32>
    %104 = vector.broadcast %103 : vector<32x1xf32> to vector<32x32xf32>
    %105 = arith.mulf %100, %104 : vector<32x32xf32>
    %106 = vector.broadcast %86 : vector<1x32xf32> to vector<32x32xf32>
    %107 = arith.mulf %105, %106 : vector<32x32xf32>
    %108 = vector.broadcast %87 : vector<1x32xf32> to vector<32x32xf32>
    %109 = arith.addf %107, %108 : vector<32x32xf32>
    %110 = arith.truncf %109 : vector<32x32xf32> to vector<32x32xbf16>
    %cst_59 = arith.constant dense<0.000000e+00> : vector<32x32xf32>
    %111 = tpu.matmul %6, %110, %cst_59 {dimension_numbers = #tpu.dot_dimension_numbers<[1], [0], [0], [1], [0, 0, 1, 1], [], []>} : vector<32x32xbf16>, vector<32x32xbf16>, vector<32x32xf32> -> vector<32x32xf32>
    %112 = arith.subf %109, %111 : vector<32x32xf32>
    %c0_60 = arith.constant 0 : index
    %c0_61 = arith.constant 0 : index
    %113 = vector.load %arg5[%c0_60, %c0_61] : memref<32x32xf32, #tpu.memory_space<vmem>>, vector<32x32xf32>
    tpu.vector_store %arg5[%c0_60, %c0_61], %112 {strides = array<i32>} : memref<32x32xf32, #tpu.memory_space<vmem>>, vector<32x32xf32>,
    return
  }
}

</mosaic_0001>

<bundles_post_ra>
// kernel: tpu_custom_call.1
= control target key start
LH: loop header
LB: loop body
LE: loop exit
PB: predicated region body
PF: predicated region fallthrough
CT: control target
= control target key end

     0   :  { %vm72_vm0 = vcmask 261120   ;;  %s2351_s0 = inlined_call_operand.vmem [shape: f32[32,32], index: 0, kind: input, shape index: {}]   ;;  %s2352_s1 = inlined_call_operand.vmem [shape: bf16[480,32], index: 1, kind: input, shape index: {}]   ;;  %s2353_s2 = inlined_call_operand.vmem [shape: bf16[64,64], index: 2, kind: input, shape index: {}]   ;;  %s2354_s3 = inlined_call_operand.vmem [shape: bf16[32,256], index: 3, kind: input, shape index: {}]   ;;  %s2355_s4 = inlined_call_operand.vmem [shape: f32[34,32], index: 4, kind: input, shape index: {}]   ;;  %s2356_s5 = inlined_call_operand.hbm [shape: f32[32,32], index: 5, kind: output, shape index: {}]  }
   0x1   :  { %v2003_v0 = vld [vmem:[%s2353_s2] sm:$0xff]   ;;  %v2004_v1 = vld [vmem:[%s2353_s2 + $0x8] sm:$0xff]   ;;  %v24_v4 = vld [vmem:[%s2351_s0 + $0x10] sm:$0xff] }
   0x2   :  { %1827 = vmatprep.subr.bf16.mxu0 %v2003_v0  ;;  %v22_v2 = vld [vmem:[%s2351_s0] sm:$0xff]  ;;  %v23_v3 = vld [vmem:[%s2351_s0 + $0x8] sm:$0xff]  ;;  %v25_v6 = vld [vmem:[%s2351_s0 + $0x18] sm:$0xff] }
   0x3   :  { %1828 = vmatpush3.bf16.msra.mxu0 %v2003_v0  ;;  %v58_v5 = vpack.c.bf16 %v23_v3, %v22_v2  ;;  %v2005_v7 = vld [vmem:[%s2352_s1 + $0xb0] sm:$0xff]   ;;  %v2006_v8 = vld [vmem:[%s2352_s1 + $0xb8] sm:$0xff]   ;;  %v59_v9 = vpack.c.bf16 %v25_v6, %v24_v4 }
   0x4   :  { %1829 = vmatprep.subr.bf16.mxu0 %v2004_v1  ;;  %1835 = vmatprep.subr.bf16.mxu1 %v2005_v7 }
   0x5   :  { %1831 = vmatprep.mubr.msk.bf16.mxu0 %vm72_vm0, %v58_v5  ;;  %1836 = vmatpush3.bf16.msra.mxu1 %v2005_v7 }
   0x6   :  { %1837 = vmatprep.subr.bf16.mxu1 %v2006_v8 }
   0x7   :  { %1830 = vmatpush3.bf16.msra.mxu0 %v2004_v1 }
   0x9   :  { %1838 = vmatpush3.bf16.msra.mxu1 %v2006_v8 }
   0xa   :  { %1832 = vmatmul.mubr.msk.bf16.vlgmr.msra.gmra.mrb[0].mxu0 %vm72_vm0, %v59_v9 }
   0xb   :  { %10 = vsyncpa [#allocation3], 0  ;;  %v2007_v10 = vld [vmem:[%s2352_s1 + $0xc0] sm:$0xff]   ;;  %v2008_v11 = vld [vmem:[%s2352_s1 + $0xc8] sm:$0xff]   ;;  %vm158_vm1 = vcmask 523264   ;;  %vm2076_vm6 = vmmov 0  }
   0xc   :  { %1839 = vmatprep.subr.bf16.mxu1 %v2007_v10  ;;  %v2148_v22 = vld [vmem:[%s2352_s1 + $0x80] sm:$0xff]   ;;  %v2155_v33 = vld [vmem:[%s2352_s1 + $0x88] sm:$0xff]   ;;  %v2012_v35 = vld [vmem:[%s2352_s1 + $0x10] sm:$0xff]   ;;  %vm1002_vm7 = vcmask 130048   ;;  %s2077_s8 = smov 112  }
   0xd   :  { %1840 = vmatpush3.bf16.msra.mxu1 %v2007_v10  ;;  %1851 = vmatprep.mubr.msk.bf16.mxu0 %vm72_vm0, %v2148_v22  ;;  %v2011_v34 = vld [vmem:[%s2352_s1] sm:$0xff]   ;;  %v2013_v36 = vld [vmem:[%s2352_s1 + $0x8] sm:$0xff]   ;;  %v2014_v37 = vld [vmem:[%s2352_s1 + $0x18] sm:$0xff]  }
   0xe   :  { %1841 = vmatprep.subr.bf16.mxu1 %v2008_v11  ;;  %v2015_v38 = vld [vmem:[%s2352_s1 + $0x20] sm:$0xff]   ;;  %v2016_v39 = vld [vmem:[%s2352_s1 + $0x30] sm:$0xff]   ;;  %v2017_v54 = vld [vmem:[%s2352_s1 + $0x28] sm:$0xff]  }
   0xf   :  { %v2018_v55 = vld [vmem:[%s2352_s1 + $0x38] sm:$0xff]   ;;  %v2019_v56 = vld [vmem:[%s2352_s1 + $0x40] sm:$0xff]   ;;  %v2020_v57 = vld [vmem:[%s2352_s1 + $0x50] sm:$0xff]  }
  0x10   :  { %v2021_v58 = vld [vmem:[%s2352_s1 + $0x48] sm:$0xff]   ;;  %v2022_v59 = vld [vmem:[%s2352_s1 + $0x58] sm:$0xff]   ;;  %v2023_v60 = vld [vmem:[%s2352_s1 + $0x60] sm:$0xff]  }
  0x11   :  { %1842 = vmatpush3.bf16.msra.mxu1 %v2008_v11  ;;  %v2024_v61 = vld [vmem:[%s2352_s1 + $0x70] sm:$0xff]   ;;  %v2025_v62 = vld [vmem:[%s2352_s1 + $0x68] sm:$0xff]   ;;  %v2026_v63 = vld [vmem:[%s2352_s1 + $0x78] sm:$0xff]  }
  0x12   :  { %1863 = vmatprep.subr.bf16.mxu1 %v2012_v35  ;;  %v2029_v0 = vld [vmem:[%s2354_s3 + $0x4] ss:$8 sps:$4 sm:$0xff]  }
  0xdd   :  { %v1833_v12 = vpop.f32.mrb[0].mxu0 }
  0xde   :  { %v113_v13 = vpop.f32.mrb[1].mxu0  ;;  %v130_v15 = vmax.f32 %v1833_v12, 0.0 }
  0xdf   :  { %v1834_v14 = vpop.f32.mrb[2].mxu0  ;;  %v128_v18 = vmax.f32 %v113_v13, 0.0 }
  0xe0   :  { %v131_v16 = vmax.f32 %v1834_v14, 0.0  ;;  %v116_v17 = vpop.f32.mrb[3].mxu0 }
  0xe1   :  { %v129_v19 = vmax.f32 %v116_v17, 0.0 }
  0xe2   :  { %v133_v20 = vpack.c.bf16 %v131_v16, %v130_v15 }
  0xe3   :  { %v132_v21 = vpack.c.bf16 %v129_v19, %v128_v18 }
  0xe5   :  { %1843 = vmatprep.mubr.msk.bf16.mxu1 %vm158_vm1, %v132_v21 }
  0xe6   :  { %1844 = vmatmul.mubr.msk.bf16.vlgmr.msra.gmra.mrb[0].mxu1 %vm158_vm1, %v133_v20 }
  0xe7   :  { %1864 = vmatpush3.bf16.msra.mxu1 %v2012_v35 }
  0xe8   :  { %1865 = vmatprep.subr.bf16.mxu1 %v2014_v37 }
  0xeb   :  { %1866 = vmatpush3.bf16.msra.mxu1 %v2014_v37 }
  0xec   :  { %1879 = vmatprep.subr.bf16.mxu1 %v2016_v39 }
 0x1b9   :  { %v1845_v23 = vpop.f32.mrb[0].mxu1 }
 0x1ba   :  { %v199_v24 = vpop.f32.mrb[1].mxu1  ;;  %v216_v30 = vadd.f32 %v1845_v23, %v24_v4 }
 0x1bb   :  { %v1846_v25 = vpop.f32.mrb[2].mxu1  ;;  %v214_v27 = vadd.f32 %v199_v24, %v22_v2 }
 0x1bc   :  { %v202_v26 = vpop.f32.mrb[3].mxu1  ;;  %v217_v28 = vadd.f32 %v1846_v25, %v25_v6 }
 0x1bd   :  { %v215_v29 = vadd.f32 %v202_v26, %v23_v3 }
 0x1be   :  { %v219_v32 = vpack.c.bf16 %v217_v28, %v216_v30 }
 0x1bf   :  { %v218_v31 = vpack.c.bf16 %v215_v29, %v214_v27 }
 0x1c1   :  { %1847 = vmatprep.subr.bf16.mxu0 %v218_v31 }
 0x1c2   :  { %1848 = vmatpush3.bf16.msra.mxu0 %v218_v31 }
 0x1c3   :  { %1849 = vmatprep.subr.bf16.mxu0 %v219_v32 }
 0x1c6   :  { %1850 = vmatpush3.bf16.msra.mxu0 %v219_v32 }
 0x1c7   :  { %1855 = vmatprep.subr.bf16.mxu0 %v2011_v34 }
 0x1c9   :  { %1852 = vmatmul.mubr.msk.bf16.vlgmr.msra.gmra.mrb[4].mxu0 %vm72_vm0, %v2155_v33 }
 0x1ca   :  { %1856 = vmatpush3.bf16.msra.mxu0 %v2011_v34 }
 0x1cb   :  { %1857 = vmatprep.subr.bf16.mxu0 %v2013_v36 }
 0x1ce   :  { %1858 = vmatpush3.bf16.msra.mxu0 %v2013_v36 }
 0x1cf   :  { %1871 = vmatprep.subr.bf16.mxu0 %v2015_v38 }
 0x29c   :  { %v1853_v40 = vpop.f32.mrb[4].mxu0 }
 0x29d   :  { %v270_v41 = vpop.f32.mrb[5].mxu0  ;;  %v287_v44 = vmul.f32 0.2, %v1853_v40 }
 0x29e   :  { %v285_v42 = vmul.f32 0.2, %v270_v41  ;;  %v1854_v43 = vpop.f32.mrb[6].mxu0 }
 0x29f   :  { %v288_v45 = vmul.f32 0.2, %v1854_v43  ;;  %v273_v46 = vpop.f32.mrb[7].mxu0  ;;  %v2183_v51 = vsub.f32 %v216_v30, %v287_v44 }
 0x2a0   :  { %v286_v47 = vmul.f32 0.2, %v273_v46  ;;  %v2179_v49 = vsub.f32 %v214_v27, %v285_v42 }
 0x2a1   :  { %v2177_v48 = vsub.f32 %v217_v28, %v288_v45 }
 0x2a2   :  { %v2181_v50 = vsub.f32 %v215_v29, %v286_v47 }
 0x2a3   :  { %v294_v53 = vpack.c.bf16 %v2177_v48, %v2183_v51 }
 0x2a4   :  { %v293_v52 = vpack.c.bf16 %v2181_v50, %v2179_v49 }
 0x2a6   :  { %1859 = vmatprep.mubr.msk.bf16.mxu0 %vm72_vm0, %v293_v52  ;;  %1867 = vmatprep.mubr.msk.bf16.mxu1 %vm72_vm0, %v293_v52 }
 0x2a7   :  { %1860 = vmatmul.mubr.msk.bf16.vlgmr.msra.gmra.mrb[8].mxu0 %vm72_vm0, %v294_v53  ;;  %1868 = vmatmul.mubr.msk.bf16.vlgmr.msra.gmra.mrb[4].mxu1 %vm72_vm0, %v294_v53 }
 0x2a8   :  { %1872 = vmatpush3.bf16.msra.mxu0 %v2015_v38  ;;  %1875 = vmatprep.mubr.msk.bf16.mxu0 %vm72_vm0, %v293_v52 }
 0x2a9   :  { %1880 = vmatpush3.bf16.msra.mxu1 %v2016_v39  ;;  %1883 = vmatprep.mubr.msk.bf16.mxu1 %vm72_vm0, %v293_v52 }
 0x2aa   :  { %1873 = vmatprep.subr.bf16.mxu0 %v2017_v54  ;;  %1881 = vmatprep.subr.bf16.mxu1 %v2018_v55 }
 0x2ac   :  { %1874 = vmatpush3.bf16.msra.mxu0 %v2017_v54 }
 0x2ad   :  { %1882 = vmatpush3.bf16.msra.mxu1 %v2018_v55  ;;  %1887 = vmatprep.subr.bf16.mxu0 %v2019_v56  ;;  %v2027_v55 = vld [vmem:[%s2354_s3] ss:$8 sps:$4 sm:$0xff]  }
 0x2ae   :  { %1895 = vmatprep.subr.bf16.mxu1 %v2020_v57 }
 0x2af   :  { %1876 = vmatmul.mubr.msk.bf16.vlgmr.msra.gmra.mrb[12].mxu0 %vm72_vm0, %v294_v53 }
 0x2b0   :  { %1884 = vmatmul.mubr.msk.bf16.vlgmr.msra.gmra.mrb[8].mxu1 %vm72_vm0, %v294_v53  ;;  %1888 = vmatpush3.bf16.msra.mxu0 %v2019_v56  ;;  %v2030_v56 = vld [vmem:[%s2354_s3 + $0x14] ss:$8 sps:$4 sm:$0xff]  }
 0x2b1   :  { %1891 = vmatprep.mubr.msk.bf16.mxu0 %vm72_vm0, %v293_v52  ;;  %1896 = vmatpush3.bf16.msra.mxu1 %v2020_v57  ;;  %v2032_v57 = vld [vmem:[%s2354_s3 + $0x10] ss:$8 sps:$4 sm:$0xff]  }
 0x2b2   :  { %1899 = vmatprep.mubr.msk.bf16.mxu1 %vm72_vm0, %v293_v52  ;;  %1889 = vmatprep.subr.bf16.mxu0 %v2021_v58 }
 0x2b3   :  { %1897 = vmatprep.subr.bf16.mxu1 %v2022_v59 }
 0x2b4   :  { %1890 = vmatpush3.bf16.msra.mxu0 %v2021_v58  ;;  %v910_v58 = vlaneseq }
 0x2b5   :  { %1898 = vmatpush3.bf16.msra.mxu1 %v2022_v59  ;;  %1903 = vmatprep.subr.bf16.mxu0 %v2023_v60 }
 0x2b6   :  { %1911 = vmatprep.subr.bf16.mxu1 %v2024_v61  ;;  %v911_v59 = vshrl.u32 %v910_v58, 7 }
 0x2b7   :  { %1892 = vmatmul.mubr.msk.bf16.vlgmr.msra.gmra.mrb[16].mxu0 %vm72_vm0, %v294_v53 }
 0x2b8   :  { %1900 = vmatmul.mubr.msk.bf16.vlgmr.msra.gmra.mrb[12].mxu1 %vm72_vm0, %v294_v53  ;;  %1904 = vmatpush3.bf16.msra.mxu0 %v2023_v60  ;;  %v916_v60 = vand.u32 127, %v910_v58 }
 0x2b9   :  { %1907 = vmatprep.mubr.msk.bf16.mxu0 %vm72_vm0, %v293_v52  ;;  %1912 = vmatpush3.bf16.msra.mxu1 %v2024_v61  ;;  %v2075_v61 = vmov 0.0  }
 0x2ba   :  { %1915 = vmatprep.mubr.msk.bf16.mxu1 %vm72_vm0, %v293_v52  ;;  %1905 = vmatprep.subr.bf16.mxu0 %v2025_v62  ;;  %vm917_vm2 = vcmp.eq.s32.totalorder %v911_v59, %v916_v60 }
 0x2bb   :  { %1913 = vmatprep.subr.bf16.mxu1 %v2026_v63 }
 0x2bc   :  { %1906 = vmatpush3.bf16.msra.mxu0 %v2025_v62  ;;  %v912_v62 = vadd.s32 8, %v911_v59 }
 0x2bd   :  { %1914 = vmatpush3.bf16.msra.mxu1 %v2026_v63  ;;  %v913_v63 = vadd.s32 16, %v911_v59 }
 0x2be   :  { %vm918_vm3 = vcmp.eq.s32.totalorder %v912_v62, %v916_v60 }
 0x2bf   :  { %1908 = vmatmul.mubr.msk.bf16.vlgmr.msra.gmra.mrb[20].mxu0 %vm72_vm0, %v294_v53  ;;  %vm919_vm4 = vcmp.eq.s32.totalorder %v913_v63, %v916_v60 }
 0x2c0   :  { %1916 = vmatmul.mubr.msk.bf16.vlgmr.msra.gmra.mrb[16].mxu1 %vm72_vm0, %v294_v53  ;;  %893 = vmatprep.mubr.bf16.mxu0 %v2029_v0  ;;  %v914_v0 = vadd.s32 24, %v911_v59 }
 0x2c2   :  { %vm920_vm5 = vcmp.eq.s32.totalorder %v914_v0, %v916_v60 }
 0x37a   :  { %v1861_v1 = vpop.f32.mrb[8].mxu0  ;;  %v1869_v2 = vpop.f32.mrb[4].mxu1 }
 0x37b   :  { %v351_v3 = vpop.f32.mrb[9].mxu0  ;;  %v416_v4 = vpop.f32.mrb[5].mxu1 }
 0x37c   :  { %v1862_v5 = vpop.f32.mrb[10].mxu0  ;;  %v1870_v6 = vpop.f32.mrb[6].mxu1 }
 0x37d   :  { %v826_v7 = vpack.c.bf16 %v1862_v5, %v1861_v1  ;;  %v828_v8 = vpack.c.bf16 %v1870_v6, %v1869_v2  ;;  %v354_v9 = vpop.f32.mrb[11].mxu0  ;;  %v419_v10 = vpop.f32.mrb[7].mxu1  ;;  %v921_v1 = vsel %vm917_vm2, 1.0, %v2075_v61  ;;  %v922_v2 = vsel %vm918_vm3, 1.0, %v2075_v61 }
 0x37e   :  { %v825_v11 = vpack.c.bf16 %v354_v9, %v351_v3  ;;  %v827_v12 = vpack.c.bf16 %v419_v10, %v416_v4  ;;  %v923_v3 = vsel %vm919_vm4, 1.0, %v2075_v61  ;;  %v924_v4 = vsel %vm920_vm5, 1.0, %v2075_v61 }
 0x37f   :  { %v925_v5 = vpack.c.bf16 %v922_v2, %v921_v1  ;;  %v926_v6 = vpack.c.bf16 %v924_v4, %v923_v3 }
 0x381   :  { %1923 = vmatprep.mubr.msk.bf16.mxu1 %vm72_vm0, %v925_v5 }
 0x382   :  { %v1877_v13 = vpop.f32.mrb[12].mxu0 }
 0x383   :  { %v1885_v14 = vpop.f32.mrb[8].mxu1  ;;  %v481_v15 = vpop.f32.mrb[13].mxu0 }
 0x384   :  { %v546_v16 = vpop.f32.mrb[9].mxu1  ;;  %v1878_v17 = vpop.f32.mrb[14].mxu0 }
 0x385   :  { %v830_v18 = vpack.c.bf16 %v1878_v17, %v1877_v13  ;;  %v1886_v19 = vpop.f32.mrb[10].mxu1  ;;  %v484_v20 = vpop.f32.mrb[15].mxu0 }
 0x386   :  { %v832_v21 = vpack.c.bf16 %v1886_v19, %v1885_v14  ;;  %v829_v23 = vpack.c.bf16 %v484_v20, %v481_v15  ;;  %v549_v24 = vpop.f32.mrb[11].mxu1 }
 0x387   :  { %v831_v25 = vpack.c.bf16 %v549_v24, %v546_v16  ;;  %v2033_v24 = vld [vmem:[%s2352_s1 + $0xa8] sm:$0xff]  }
 0x38a   :  { %v1893_v26 = vpop.f32.mrb[16].mxu0 }
 0x38b   :  { %v1901_v27 = vpop.f32.mrb[12].mxu1  ;;  %v611_v28 = vpop.f32.mrb[17].mxu0 }
 0x38c   :  { %v676_v29 = vpop.f32.mrb[13].mxu1  ;;  %v1894_v30 = vpop.f32.mrb[18].mxu0 }
 0x38d   :  { %v834_v31 = vpack.c.bf16 %v1894_v30, %v1893_v26  ;;  %v1902_v32 = vpop.f32.mrb[14].mxu1  ;;  %v614_v34 = vpop.f32.mrb[19].mxu0 }
 0x38e   :  { %v836_v35 = vpack.c.bf16 %v1902_v32, %v1901_v27  ;;  %v833_v36 = vpack.c.bf16 %v614_v34, %v611_v28  ;;  %v679_v37 = vpop.f32.mrb[15].mxu1 }
 0x38f   :  { %v835_v38 = vpack.c.bf16 %v679_v37, %v676_v29 }
 0x390   :  { %1765 = vmatprep.subr.bf16.mxu0 %v833_v36 }
 0x391   :  { %1766 = vmatpush3.bf16.msra.mxu0 %v825_v11 }
 0x392   :  { %v1909_v39 = vpop.f32.mrb[20].mxu0  ;;  %1767 = vmatprep.subr.bf16.mxu0 %v834_v31 }
 0x393   :  { %v1917_v40 = vpop.f32.mrb[16].mxu1  ;;  %v741_v41 = vpop.f32.mrb[21].mxu0 }
 0x394   :  { %v806_v42 = vpop.f32.mrb[17].mxu1  ;;  %v1910_v43 = vpop.f32.mrb[22].mxu0 }
 0x395   :  { %v838_v44 = vpack.c.bf16 %v1910_v43, %v1909_v39  ;;  %v1918_v45 = vpop.f32.mrb[18].mxu1  ;;  %v744_v46 = vpop.f32.mrb[23].mxu0  ;;  %1768 = vmatpush3.bf16.msra.mxu0 %v826_v7 }
 0x396   :  { %v840_v47 = vpack.c.bf16 %v1918_v45, %v1917_v40  ;;  %v837_v52 = vpack.c.bf16 %v744_v46, %v741_v41  ;;  %v809_v53 = vpop.f32.mrb[19].mxu1  ;;  %1769 = vmatprep.subr.bf16.mxu0 %v835_v38  ;;  %v1191_v40 = vld [vmem:[%s2355_s4] sm:$0xff] }
 0x397   :  { %v839_v54 = vpack.c.bf16 %v809_v53, %v806_v42 }
 0x399   :  { %1770 = vmatpush3.bf16.msra.mxu0 %v827_v12 }
 0x39a   :  { %1771 = vmatprep.subr.bf16.mxu0 %v836_v35 }
 0x39d   :  { %1772 = vmatpush3.bf16.msra.mxu0 %v828_v8 }
 0x39e   :  { %1773 = vmatprep.subr.bf16.mxu0 %v837_v52 }
 0x3a1   :  { %1774 = vmatpush3.bf16.msra.mxu0 %v829_v23 }
 0x3a2   :  { %1775 = vmatprep.subr.bf16.mxu0 %v838_v44  ;;  %v1192_v44 = vld [vmem:[%s2355_s4 + $0x8] sm:$0xff] }
 0x3a5   :  { %1776 = vmatpush3.bf16.msra.mxu0 %v830_v18 }
 0x3a6   :  { %1777 = vmatprep.subr.bf16.mxu0 %v839_v54 }
 0x3a9   :  { %1778 = vmatpush3.bf16.msra.mxu0 %v831_v25  ;;  %v2034_v25 = vld [vmem:[%s2352_s1 + $0xa0] sm:$0xff]  }
 0x3aa   :  { %1779 = vmatprep.subr.bf16.mxu0 %v840_v47 }
 0x3ad   :  { %1780 = vmatpush3.bf16.msra.mxu0 %v832_v21 }
 0x3ae   :  { %1945 = vmatprep.subr.bf16.mxu0 %v2075_v61 }
 0x3b0   :  { %894 = vmatmul.mubr.bf16.vlgmr.msra.gmra.mrb[24].mxu0 %v2027_v55 }
 0x3b1   :  { %901 = vmatprep.mubr.bf16.mxu0 %v2030_v56  ;;  %1946 = vmatpush3.bf16.msra.mxu0 %v2034_v25 }
 0x3b8   :  { %902 = vmatmul.mubr.bf16.gmra.mrb[28].mxu0 %v2032_v57 }
 0x3b9   :  { %1947 = vmatprep.mubr.msk.bf16.mxu0 %vm2076_vm6, %v2075_v61 }
 0x483   :  { %v1781_v7 = vpop.f32.mrb[24].mxu0 }
 0x484   :  { %v1782_v8 = vpop.f32.mrb[25].mxu0 }
 0x485   :  { %v1783_v9 = vadd.f32 %v1782_v8, %v1781_v7  ;;  %v1784_v10 = vpop.f32.mrb[26].mxu0  ;;  %v2035_v7 = vld [vmem:[%s2353_s2 + $0x10] sm:$0xff]   ;;  %v2036_v8 = vld [vmem:[%s2353_s2 + $0x18] sm:$0xff]  }
 0x486   :  { %v1785_v11 = vpop.f32.mrb[27].mxu0  ;;  %1959 = vmatprep.subr.bf16.mxu0 %v2035_v7 }
 0x487   :  { %v1786_v12 = vadd.f32 %v1785_v11, %v1784_v10 }
 0x489   :  { %v927_v13 = vpack.c.bf16 %v1786_v12, %v1783_v9 }
 0x48b   :  { %v1787_v14 = vpop.f32.mrb[28].mxu0  ;;  %1995 = vmatprep.subr.msk.bf16.mxu1 %vm72_vm0, %v927_v13  ;;  %v936_v15 = vsel %vm72_vm0, %v927_v13, 0 }
 0x48c   :  { %v1788_v16 = vpop.f32.mrb[29].mxu0  ;;  %1920 = vmatpush3.bf16.xpose.msra.mxu1 %v936_v15 }
 0x48d   :  { %v1789_v17 = vadd.f32 %v1788_v16, %v1787_v14  ;;  %v1790_v18 = vpop.f32.mrb[30].mxu0 }
 0x48e   :  { %v1791_v19 = vpop.f32.mrb[31].mxu0 }
 0x48f   :  { %v1792_v20 = vadd.f32 %v1791_v19, %v1790_v18 }
 0x491   :  { %v928_v21 = vpack.c.bf16 %v1792_v20, %v1789_v17 }
 0x493   :  { %1996 = vmatprep.subr.msk.bf16.mxu1 %vm72_vm0, %v928_v21  ;;  %v939_v23 = vsel %vm72_vm0, %v928_v21, 0 }
 0x494   :  { %1922 = vmatpush3.bf16.xpose.msra.mxu1 %v939_v23 }
 0x495   :  { %1927 = vmatprep.subr.bf16.mxu1 %v2075_v61 }
 0x49b   :  { %1924 = vmatmul.mubr.msk.bf16.vlgmr.msra.gmra.mrb[20].mxu1 %vm72_vm0, %v926_v6 }
 0x49c   :  { %1928 = vmatpush3.bf16.msra.mxu1 %v2033_v24  ;;  %1929 = vmatprep.mubr.msk.bf16.mxu1 %vm2076_vm6, %v2075_v61 }
 0x49d   :  { %1933 = vmatprep.subr.bf16.mxu1 %v2075_v61 }
 0x56e   :  { %v1925_v26 = vpop.f32.mrb[20].mxu1 }
 0x56f   :  { %v975_v27 = vpop.f32.mrb[21].mxu1 }
 0x570   :  { %v1926_v28 = vpop.f32.mrb[22].mxu1 }
 0x571   :  { %v995_v29 = vpack.c.bf16 %v1926_v28, %v1925_v26  ;;  %v978_v30 = vpop.f32.mrb[23].mxu1 }
 0x572   :  { %v994_v31 = vpack.c.bf16 %v978_v30, %v975_v27 }
 0x573   :  { %1098 = vrot.lane.b32.xlu0 %v995_v29, %s2077_s8  ;;  %1930 = vmatmul.mubr.msk.bf16.vlgmr.msra.gmra.mrb[24].mxu1 %vm1002_vm7, %v995_v29 }
 0x574   :  { %1934 = vmatpush3.bf16.msra.mxu1 %v2034_v25  ;;  %1935 = vmatprep.mubr.msk.bf16.mxu1 %vm2076_vm6, %v2075_v61  ;;  %v2040_v25 = vld [vmem:[%s2352_s1 + $0xe8] sm:$0xff]  }
 0x575   :  { %1939 = vmatprep.subr.bf16.mxu1 %v2075_v61 }
 0x577   :  { %1145 = vrot.lane.b32.xlu0 %v994_v31, %s2077_s8 }
 0x57b   :  { %1936 = vmatmul.mubr.msk.bf16.vlgmr.msra.gmra.mrb[28].mxu1 %vm1002_vm7, %v994_v31 }
 0x57c   :  { %1940 = vmatpush3.bf16.msra.mxu1 %v2033_v24  ;;  %1941 = vmatprep.mubr.msk.bf16.mxu1 %vm2076_vm6, %v2075_v61  ;;  %v1193_v61 = vld [vmem:[%s2355_s4 + $0x10] sm:$0xff]  ;;  %v2039_v24 = vld [vmem:[%s2352_s1 + $0xe0] sm:$0xff]  }
 0x5e5   :  { %v1099_v32 = vpop.permute.xlu0 %1098 }
 0x5e6   :  { %1942 = vmatmul.mubr.msk.bf16.vlgmr.msra.gmra.mrb[32].mxu1 %vm1002_vm7, %v1099_v32 }
 0x5e7   :  { %1955 = vmatprep.mubr.msk.bf16.mxu1 %vm72_vm0, %v2148_v22 }
 0x5e9   :  { %v1146_v34 = vpop.permute.xlu0 %1145 }
 0x5ea   :  { %1948 = vmatmul.mubr.msk.bf16.vlgmr.msra.gmra.mrb[32].mxu0 %vm1002_vm7, %v1146_v34 }
 0x5eb   :  { %1960 = vmatpush3.bf16.msra.mxu0 %v2035_v7 }
 0x5ec   :  { %1961 = vmatprep.subr.bf16.mxu0 %v2036_v8 }
 0x5ef   :  { %1962 = vmatpush3.bf16.msra.mxu0 %v2036_v8 }
 0x646   :  { %v1040_v35 = vpop.f32.mrb[24].mxu1 }
 0x647   :  { %v1931_v36 = vpop.f32.mrb[25].mxu1 }
 0x648   :  { %v1043_v37 = vpop.f32.mrb[26].mxu1 }
 0x649   :  { %v1932_v38 = vpop.f32.mrb[27].mxu1 }
 0x64e   :  { %v1090_v39 = vpop.f32.mrb[28].mxu1 }
 0x64f   :  { %v1091_v41 = vadd.f32 %v1090_v39, %v1040_v35  ;;  %v1937_v42 = vpop.f32.mrb[29].mxu1 }
 0x650   :  { %v1093_v43 = vpop.f32.mrb[30].mxu1 }
 0x651   :  { %v1195_v45 = vadd.f32 %v1191_v40, %v1091_v41  ;;  %v1094_v46 = vadd.f32 %v1093_v43, %v1043_v37  ;;  %v1938_v47 = vpop.f32.mrb[31].mxu1 }
 0x653   :  { %v1196_v52 = vadd.f32 %v1192_v44, %v1094_v46  ;;  %v1199_v53 = vadd.f32 %v1195_v45, %v2179_v49  ;;  %v1194_v49 = vld [vmem:[%s2355_s4 + $0x18] sm:$0xff] }
 0x655   :  { %v1200_v54 = vadd.f32 %v1196_v52, %v2181_v50 }
 0x657   :  { %v1203_v55 = vpack.c.bf16 %v1200_v54, %v1199_v53 }
 0x659   :  { %1951 = vmatprep.subr.bf16.mxu1 %v1203_v55 }
 0x65a   :  { %1952 = vmatpush3.bf16.msra.mxu1 %v1203_v55 }
 0x6b9   :  { %v1137_v56 = vpop.f32.mrb[32].mxu1 }
 0x6ba   :  { %v1943_v57 = vpop.f32.mrb[33].mxu1 }
 0x6bb   :  { %v1140_v58 = vpop.f32.mrb[34].mxu1 }
 0x6bc   :  { %v1944_v59 = vpop.f32.mrb[35].mxu1 }
 0x6bd   :  { %v1184_v60 = vpop.f32.mrb[32].mxu0 }
 0x6be   :  { %v1185_v62 = vadd.f32 %v1184_v60, %v1137_v56  ;;  %v1949_v63 = vpop.f32.mrb[33].mxu0 }
 0x6bf   :  { %v1187_v0 = vpop.f32.mrb[34].mxu0 }
 0x6c0   :  { %v1197_v50 = vadd.f32 %v1193_v61, %v1185_v62  ;;  %v1188_v1 = vadd.f32 %v1187_v0, %v1140_v58  ;;  %v1950_v2 = vpop.f32.mrb[35].mxu0 }
 0x6c2   :  { %v1198_v3 = vadd.f32 %v1194_v49, %v1188_v1  ;;  %v1201_v4 = vadd.f32 %v1197_v50, %v2183_v51  ;;  %v2038_v51 = vld [vmem:[%s2352_s1 + $0xd8] sm:$0xff]  }
 0x6c4   :  { %v1202_v5 = vadd.f32 %v1198_v3, %v2177_v48  ;;  %v2037_v48 = vld [vmem:[%s2352_s1 + $0xd0] sm:$0xff]  }
 0x6c6   :  { %v1204_v6 = vpack.c.bf16 %v1202_v5, %v1201_v4 }
 0x6c8   :  { %1953 = vmatprep.subr.bf16.mxu1 %v1204_v6 }
 0x6c9   :  { %1954 = vmatpush3.bf16.msra.mxu1 %v1204_v6 }
 0x6ca   :  { %1967 = vmatprep.subr.bf16.mxu1 %v2037_v48 }
 0x6cc   :  { %1956 = vmatmul.mubr.msk.bf16.vlgmr.msra.gmra.mrb[36].mxu1 %vm72_vm0, %v2155_v33 }
 0x6cd   :  { %1968 = vmatpush3.bf16.msra.mxu1 %v2037_v48 }
 0x6ce   :  { %1969 = vmatprep.subr.bf16.mxu1 %v2038_v51 }
 0x6d1   :  { %1970 = vmatpush3.bf16.msra.mxu1 %v2038_v51 }
 0x6d2   :  { %1971 = vmatprep.subr.bf16.mxu1 %v2039_v24 }
 0x6d5   :  { %1972 = vmatpush3.bf16.msra.mxu1 %v2039_v24 }
 0x6d6   :  { %1973 = vmatprep.subr.bf16.mxu1 %v2040_v25 }
 0x6d9   :  { %1974 = vmatpush3.bf16.msra.mxu1 %v2040_v25 }
 0x79f   :  { %v1957_v9 = vpop.f32.mrb[36].mxu1 }
 0x7a0   :  { %v1239_v10 = vpop.f32.mrb[37].mxu1  ;;  %v1256_v13 = vmul.f32 0.2, %v1957_v9 }
 0x7a1   :  { %v1254_v11 = vmul.f32 0.2, %v1239_v10  ;;  %v1958_v12 = vpop.f32.mrb[38].mxu1 }
 0x7a2   :  { %v1257_v14 = vmul.f32 0.2, %v1958_v12  ;;  %v1242_v15 = vpop.f32.mrb[39].mxu1  ;;  %v1260_v20 = vsub.f32 %v1201_v4, %v1256_v13 }
 0x7a3   :  { %v1255_v16 = vmul.f32 0.2, %v1242_v15  ;;  %v1258_v18 = vsub.f32 %v1199_v53, %v1254_v11 }
 0x7a4   :  { %v1261_v17 = vsub.f32 %v1202_v5, %v1257_v14 }
 0x7a5   :  { %v1259_v19 = vsub.f32 %v1200_v54, %v1255_v16 }
 0x7a6   :  { %v1263_v23 = vpack.c.bf16 %v1261_v17, %v1260_v20 }
 0x7a7   :  { %v1262_v21 = vpack.c.bf16 %v1259_v19, %v1258_v18 }
 0x7a9   :  { %1963 = vmatprep.mubr.msk.bf16.mxu0 %vm72_vm0, %v1262_v21 }
 0x7aa   :  { %1964 = vmatmul.mubr.msk.bf16.vlgmr.msra.gmra.mrb[36].mxu0 %vm72_vm0, %v1263_v23 }
 0x7ab   :  { %1983 = vmatprep.mubr.msk.bf16.mxu0 %vm72_vm0, %v2148_v22 }
 0x87d   :  { %v1965_v26 = vpop.f32.mrb[36].mxu0 }
 0x87e   :  { %v1316_v27 = vpop.f32.mrb[37].mxu0  ;;  %v1333_v29 = vmax.f32 %v1965_v26, 0.0 }
 0x87f   :  { %v1966_v28 = vpop.f32.mrb[38].mxu0  ;;  %v1331_v32 = vmax.f32 %v1316_v27, 0.0 }
 0x880   :  { %v1334_v30 = vmax.f32 %v1966_v28, 0.0  ;;  %v1319_v31 = vpop.f32.mrb[39].mxu0 }
 0x881   :  { %v1332_v22 = vmax.f32 %v1319_v31, 0.0 }
 0x882   :  { %v1336_v34 = vpack.c.bf16 %v1334_v30, %v1333_v29 }
 0x883   :  { %v1335_v35 = vpack.c.bf16 %v1332_v22, %v1331_v32 }
 0x885   :  { %1975 = vmatprep.mubr.msk.bf16.mxu1 %vm158_vm1, %v1335_v35  ;;  %v1713_v35 = vld [vmem:[%s2355_s4 + $0x20] ss:$0 sm:$0xff] }
 0x886   :  { %1976 = vmatmul.mubr.msk.bf16.vlgmr.msra.gmra.mrb[40].mxu1 %vm158_vm1, %v1336_v34 }
 0x959   :  { %v1977_v36 = vpop.f32.mrb[40].mxu1 }
 0x95a   :  { %v1401_v37 = vpop.f32.mrb[41].mxu1  ;;  %v1418_v43 = vadd.f32 %v1977_v36, %v1260_v20 }
 0x95b   :  { %v1978_v38 = vpop.f32.mrb[42].mxu1  ;;  %v1416_v40 = vadd.f32 %v1401_v37, %v1258_v18 }
 0x95c   :  { %v1404_v39 = vpop.f32.mrb[43].mxu1  ;;  %v1419_v41 = vadd.f32 %v1978_v38, %v1261_v17  ;;  %v2041_v17 = vld [vmem:[%s2352_s1 + $0x90] sm:$0xff]  }
 0x95d   :  { %v1417_v42 = vadd.f32 %v1404_v39, %v1259_v19 }
 0x95e   :  { %v1421_v45 = vpack.c.bf16 %v1419_v41, %v1418_v43 }
 0x95f   :  { %v1420_v44 = vpack.c.bf16 %v1417_v42, %v1416_v40 }
 0x961   :  { %1979 = vmatprep.subr.bf16.mxu0 %v1420_v44 }
 0x962   :  { %1980 = vmatpush3.bf16.msra.mxu0 %v1420_v44 }
 0x963   :  { %1981 = vmatprep.subr.bf16.mxu0 %v1421_v45 }
 0x966   :  { %1982 = vmatpush3.bf16.msra.mxu0 %v1421_v45 }
 0x969   :  { %1984 = vmatmul.mubr.msk.bf16.vlgmr.msra.gmra.mrb[40].mxu0 %vm72_vm0, %v2155_v33 }
 0x96a   :  { %1991 = vmatprep.mubr.msk.bf16.mxu0 %vm72_vm0, %v2041_v17 }
 0xa3c   :  { %v1985_v46 = vpop.f32.mrb[40].mxu0 }
 0xa3d   :  { %v1473_v47 = vmul.f32 0.2, %v1985_v46  ;;  %v1456_v52 = vpop.f32.mrb[41].mxu0 }
 0xa3e   :  { %v1471_v53 = vmul.f32 0.2, %v1456_v52  ;;  %v1986_v54 = vpop.f32.mrb[42].mxu0 }
 0xa3f   :  { %v1459_v55 = vpop.f32.mrb[43].mxu0  ;;  %v1477_v56 = vsub.f32 %v1418_v43, %v1473_v47  ;;  %v1474_v60 = vmul.f32 0.2, %v1986_v54 }
 0xa40   :  { %v1472_v57 = vmul.f32 0.2, %v1459_v55  ;;  %v1475_v58 = vsub.f32 %v1416_v40, %v1471_v53  ;;  %v2042_v55 = vld [vmem:[%s2352_s1 + $0x98] sm:$0xff]  }
 0xa41   :  { %v1487_v59 = vsel %vm72_vm0, %v1477_v56, 0.0  ;;  %v1478_v33 = vsub.f32 %v1419_v41, %v1474_v60  ;;  %v1714_v41 = vld [vmem:[%s2355_s4 + $0x21] ss:$0 sm:$0xff]  ;;  %s2078_s4 = smov [#allocation2]  }
 0xa42   :  { %1488 = vadd.xlane.f32.xlu0 %v1487_v59  ;;  %v1481_v61 = vsel %vm72_vm0, %v1475_v58, 0.0  ;;  %v1476_v62 = vsub.f32 %v1417_v42, %v1472_v57  ;;  %s1630_s0 = sshll.u32 %s2078_s4, 4  ;;  %s1631_s0 = int_to_ptr.vmem [resolvable:$true] %s1630_s0 }
 0xa43   :  { %1482 = vadd.xlane.f32.xlu1 %v1481_v61  ;;  %v1490_v0 = vsel %vm72_vm0, %v1478_v33, 0.0  ;;  %s2051_s1 = scalar_lea.vmem %s1631_s0, 512  ;;  %p2056_p1 = scmp.lt.s32.totalorder %s1631_s0, %s1631_s0 }
 0xa44   :  { %v1484_v63 = vsel %vm72_vm0, %v1476_v62, 0.0  ;;  %p2052_p0 = scmp.ne.s32.totalorder %s1631_s0, %s2051_s1  ;;  %p2057_p2 = scmp.lt.s32.totalorder %s2051_s1, %s2051_s1 }
 0xa46   :  { %p2058_p3 = por %p2057_p2, %p2056_p1 }
 0xa47   :  { %1485 = vadd.xlane.f32.xlu1 %v1484_v63 }
 0xa48   :  { %p2059_p4 = pnand %p2058_p3, %p2052_p0 }
 0xa4b   :  { %1491 = vadd.xlane.f32.xlu1 %v1490_v0 }
 0xacf   :  { %v1489_v49 = vpop.xlane.xlu0 %1488 }
 0xad0   :  { %v1496_v50 = vmul.f32 0.03125, %v1489_v49  ;;  %v1483_v1 = vpop.xlane.xlu1 %1482 }
 0xad1   :  { %v1494_v2 = vmul.f32 0.03125, %v1483_v1 }
 0xad2   :  { %v1500_v3 = vsub.f32 %v1477_v56, %v1496_v50 }
 0xad3   :  { %v1498_v4 = vsub.f32 %v1475_v58, %v1494_v2 }
 0xad4   :  { %v1486_v5 = vpop.xlane.xlu1 %1485  ;;  %v1504_v6 = vmul.f32 %v1500_v3, %v1500_v3 }
 0xad5   :  { %v1495_v7 = vmul.f32 0.03125, %v1486_v5  ;;  %v1502_v48 = vmul.f32 %v1498_v4, %v1498_v4 }
 0xad6   :  { %v1512_v8 = vsel %vm72_vm0, %v1504_v6, 0.0 }
 0xad7   :  { %v1499_v51 = vsub.f32 %v1476_v62, %v1495_v7  ;;  %1513 = vadd.xlane.f32.xlu1 %v1512_v8  ;;  %v1506_v11 = vsel %vm72_vm0, %v1502_v48, 0.0 }
 0xad8   :  { %v1492_v9 = vpop.xlane.xlu1 %1491 }
 0xad9   :  { %v1497_v10 = vmul.f32 0.03125, %v1492_v9  ;;  %v1503_v12 = vmul.f32 %v1499_v51, %v1499_v51 }
 0xadb   :  { %v1501_v13 = vsub.f32 %v1478_v33, %v1497_v10  ;;  %1507 = vadd.xlane.f32.xlu1 %v1506_v11  ;;  %v1509_v14 = vsel %vm72_vm0, %v1503_v12, 0.0 }
 0xadd   :  { %v1505_v15 = vmul.f32 %v1501_v13, %v1501_v13 }
 0xadf   :  { %1510 = vadd.xlane.f32.xlu1 %v1509_v14  ;;  %v1515_v16 = vsel %vm72_vm0, %v1505_v15, 0.0 }
 0xae3   :  { %1516 = vadd.xlane.f32.xlu1 %v1515_v16 }
 0xb64   :  { %v1514_v18 = vpop.xlane.xlu1 %1513 }
 0xb65   :  { %v1520_v19 = vmul.f32 0.03125, %v1514_v18 }
 0xb67   :  { %v1524_v23 = vadd.f32 1e-05, %v1520_v19 }
 0xb68   :  { %v1508_v20 = vpop.xlane.xlu1 %1507 }
 0xb69   :  { %v1518_v21 = vmul.f32 0.03125, %v1508_v20 }
 0xb6b   :  { %v1522_v24 = vadd.f32 1e-05, %v1518_v21 }
 0xb6c   :  { %v1511_v25 = vpop.xlane.xlu1 %1510 }
 0xb6d   :  { %2043 = vrsqrt.f32 %v1522_v24  ;;  %v1519_v26 = vmul.f32 0.03125, %v1511_v25 }
 0xb6e   :  { %2045 = vrsqrt.f32 %v1524_v23 }
 0xb6f   :  { %v1523_v27 = vadd.f32 1e-05, %v1519_v26 }
 0xb70   :  { %v1517_v28 = vpop.xlane.xlu1 %1516 }
 0xb71   :  { %2047 = vrsqrt.f32 %v1523_v27  ;;  %v1521_v29 = vmul.f32 0.03125, %v1517_v28 }
 0xb73   :  { %v1525_v30 = vadd.f32 1e-05, %v1521_v29 }
 0xb75   :  { %2049 = vrsqrt.f32 %v1525_v30 }
 0xb77   :  { %v2044_v31 = vpop.eup %2043 }
 0xb78   :  { %v1530_v32 = vmul.f32 %v2044_v31, %v1498_v4  ;;  %v2046_v22 = vpop.eup %2045 }
 0xb79   :  { %v1532_v38 = vmul.f32 %v2046_v22, %v1500_v3 }
 0xb7a   :  { %v1538_v37 = vmul.f32 %v1713_v35, %v1530_v32 }
 0xb7b   :  { %v2048_v34 = vpop.eup %2047  ;;  %v1540_v45 = vmul.f32 %v1713_v35, %v1532_v38 }
 0xb7c   :  { %v1531_v36 = vmul.f32 %v2048_v34, %v1499_v51  ;;  %v1546_v42 = vadd.f32 %v1714_v41, %v1538_v37 }
 0xb7d   :  { %v1548_v52 = vadd.f32 %v1714_v41, %v1540_v45 }
 0xb7e   :  { %v1539_v39 = vmul.f32 %v1713_v35, %v1531_v36 }
 0xb7f   :  { %v2050_v40 = vpop.eup %2049 }
 0xb80   :  { %v1547_v43 = vadd.f32 %v1714_v41, %v1539_v39  ;;  %v1533_v44 = vmul.f32 %v2050_v40, %v1501_v13 }
 0xb82   :  { %v1550_v46 = vpack.c.bf16 %v1547_v43, %v1546_v42  ;;  %v1541_v47 = vmul.f32 %v1713_v35, %v1533_v44 }
 0xb84   :  { %1987 = vmatprep.subr.bf16.mxu0 %v1550_v46  ;;  %v1549_v53 = vadd.f32 %v1714_v41, %v1541_v47 }
 0xb85   :  { %1988 = vmatpush3.bf16.msra.mxu0 %v1550_v46 }
 0xb86   :  { %v1551_v54 = vpack.c.bf16 %v1549_v53, %v1548_v52 }
 0xb88   :  { %1989 = vmatprep.subr.bf16.mxu0 %v1551_v54 }
 0xb89   :  { %1990 = vmatpush3.bf16.msra.mxu0 %v1551_v54 }
 0xb8c   :  { %1992 = vmatmul.mubr.msk.bf16.vlgmr.msra.gmra.mrb[44].mxu0 %vm72_vm0, %v2042_v55 }
 0xc5f   :  { %v1993_v56 = vpop.f32.mrb[44].mxu0 }
 0xc60   :  { %v1619_v57 = vsub.f32 %v1548_v52, %v1993_v56  ;;  %v1602_v58 = vpop.f32.mrb[45].mxu0 }
 0xc61   :  { %v1617_v59 = vsub.f32 %v1546_v42, %v1602_v58  ;;  %v1994_v60 = vpop.f32.mrb[46].mxu0 }
 0xc62   :  { %1623 = vst.msk [vmem:[#allocation2 + $0x10] sm:$0xff] %vm72_vm0, %v1619_v57  ;;  %v1620_v61 = vsub.f32 %v1549_v53, %v1994_v60  ;;  %v1605_v62 = vpop.f32.mrb[47].mxu0 }
 0xc63   :  { %1621 = vst.msk [vmem:[#allocation2] sm:$0xff] %vm72_vm0, %v1617_v59  ;;  %v1618_v63 = vsub.f32 %v1547_v43, %v1605_v62 }
 0xc64   :  { %1624 = vst.msk [vmem:[#allocation2 + $0x18] sm:$0xff] %vm72_vm0, %v1620_v61 }
 0xc65   :  { %1622 = vst.msk [vmem:[#allocation2 + $0x8] sm:$0xff] %vm72_vm0, %v1618_v63 }
 0xc66   :  { %2062 = shalt.err (!%p2059_p4)
}
 0xc67   :  { %s2063_s11 = scalar_lea.hbm %s2356_s5, 512 }
 0xc68   :  { %p2064_p5 = scmp.ne.s32.totalorder %s2356_s5, %s2063_s11  ;;  %p2067_p6 = scmp.lt.u32.totalorder %s2063_s11, %s2356_s5 }
 0xc6a   :  { %p2069_p7 = pnand %p2067_p6, %p2064_p5 }
 0xc6c   :  { %2072 = shalt.err (!%p2069_p7)
}
 0xc6d   :  { %s2079_s16 = smov 128   ;;  %s2080_s17 = smov 8  }
 0xc6e   :  { %1636 = dma.vmem_to_hbm [thread:$0]  %s1631_s0, 512, %s2356_s5, [#allocation3], %s2079_s16, %s2079_s16, %s2080_s17  }
 0xc6f   :  { %2073 = dma.done.wait [#allocation3], 512  }
 0xc70   :  { %2074 = vsyncadd [#allocation3], 4294966784 }
 0xc71   :  { %1640 = vsyncpa [#allocation3], 1 }

</bundles_post_ra>
